<compile_context>
chip_gen: v7x
topology: tpu7x:2x2x1
jax: 0.10.0
libtpu: 0.0.40
codegen_flags: <defaults>
</compile_context>

<pallas_src>
import math
from functools import partial

import jax
import jax.numpy as jnp
from jax.experimental import pallas as pl
from jax.experimental.pallas import tpu as pltpu

# Gate order along the fused lane axis: [input | forget | output | candidate]


def _lstm_kernel(xproj_ref, h0_ref, c0_ref, wh_ref,
                 out_ref, hN_ref, cN_ref,
                 h_sc, c_sc, *, t_block, hidden):
    """One grid step == T_BLOCK LSTM time steps.

    xproj_ref : (T_BLOCK, B, 4H)  precomputed x_t @ W_x + b for this block
    h0_ref    : (B, H)            initial hidden state
    c0_ref    : (B, H)            initial cell state
    wh_ref    : (H, 4H)           fused hidden->hidden weights (i,f,o,c)
    out_ref   : (T_BLOCK, B, H)   hidden states for this time block
    hN_ref, cN_ref : (B, H)       final states (written only on last block)
    h_sc, c_sc: (B, H) f32 VMEM scratch carrying the recurrent state
    """
    blk = pl.program_id(0)
    H = hidden

    @pl.when(blk == 0)
    def _():
        h_sc[...] = h0_ref[...].astype(jnp.float32)
        c_sc[...] = c0_ref[...].astype(jnp.float32)

    # Hoist the resident-weight load out of the unrolled time loop.
    wh = wh_ref[...]                       # (H, 4H)

    def step(t, carry):
        h_prev, c_prev = carry             # (B, H) f32, vreg-carried
        # Single fused-gate matmul per step: (B,H) x (H,4H) -> (B,4H).
        pre = xproj_ref[t].astype(jnp.float32) + jnp.dot(
            h_prev, wh, preferred_element_type=jnp.float32)
        # Two EUP launches on the fused preactivation.
        sig_part = jax.nn.sigmoid(pre[:, : 3 * H])     # i | f | o
        c_tilda = jnp.tanh(pre[:, 3 * H:])             # candidate
        i_g = sig_part[:, :H]
        f_g = sig_part[:, H:2 * H]
        o_g = sig_part[:, 2 * H:]
        c_new = f_g * c_prev + i_g * c_tilda
        h_new = o_g * jnp.tanh(c_new)
        out_ref[t] = h_new.astype(out_ref.dtype)
        return h_new, c_new

    h_fin, c_fin = jax.lax.fori_loop(
        0, t_block, step, (h_sc[...], c_sc[...]), unroll=True)

    # Spill the carry to scratch only at the block boundary.
    h_sc[...] = h_fin
    c_sc[...] = c_fin

    # Final-state outputs only on the last block (output residency handles
    # the HBM writeback at grid end).
    @pl.when(blk == pl.num_programs(0) - 1)
    def _():
        hN_ref[...] = h_fin.astype(hN_ref.dtype)
        cN_ref[...] = c_fin.astype(cN_ref.dtype)


def _pick_t_block(seq_len, cap=32):
    """Largest divisor of seq_len not exceeding `cap` (keeps unroll bounded)."""
    for tb in range(min(seq_len, cap), 0, -1):
        if seq_len % tb == 0:
            return tb
    return 1


@partial(jax.jit, static_argnames=("t_block",))
def lstm_layer_forward(x, h0, c0, W_x, W_h, b, *, t_block=None):
    """x: (B, S, D) f32.  W_x: (D,4H), W_h: (H,4H), b: (4H,) fused (i,f,o,c).

    Returns (outputs (B,S,H), (h_n, c_n)) matching the PyTorch LSTMLayer.
    """
    B, S, D = x.shape
    H = h0.shape[1]
    G = 4 * H

    # Hoisted input projection: one large matmul over all time steps,
    # produced directly time-major (S, B, 4H) with the bias folded in.
    xproj = jnp.einsum('bsd,dg->sbg', x, W_x,
                       preferred_element_type=jnp.float32) + b[None, None, :]

    if t_block is None:
        t_block = _pick_t_block(S)
    n_blocks = S // t_block

    kernel = partial(_lstm_kernel, t_block=t_block, hidden=H)

    out_seq, h_n, c_n = pl.pallas_call(
        kernel,
        out_shape=(
            jax.ShapeDtypeStruct((S, B, H), x.dtype),
            jax.ShapeDtypeStruct((B, H), x.dtype),
            jax.ShapeDtypeStruct((B, H), x.dtype),
        ),
        grid_spec=pltpu.PrefetchScalarGridSpec(
            num_scalar_prefetch=0,
            grid=(n_blocks,),
            in_specs=[
                pl.BlockSpec((t_block, B, G), lambda i: (i, 0, 0)),  # xproj blk
                pl.BlockSpec((B, H), lambda i: (0, 0)),              # h0
                pl.BlockSpec((B, H), lambda i: (0, 0)),              # c0
                pl.BlockSpec((H, G), lambda i: (0, 0)),              # fused W_h
            ],
            out_specs=[
                pl.BlockSpec((t_block, B, H), lambda i: (i, 0, 0)),  # hidden blk
                pl.BlockSpec((B, H), lambda i: (0, 0)),              # final h
                pl.BlockSpec((B, H), lambda i: (0, 0)),              # final c
            ],
            scratch_shapes=[
                pltpu.VMEM((B, H), jnp.float32),  # h carry across blocks
                pltpu.VMEM((B, H), jnp.float32),  # c carry across blocks
            ],
        ),
        compiler_params=pltpu.CompilerParams(
            dimension_semantics=("arbitrary",)),  # sequential recurrence
    )(xproj, h0, c0, W_h)

    # Faithfully reproduce: torch.cat(outputs, dim=0).view(bs, seq_len, hidden)
    outputs = out_seq.reshape(B, S, H)
    return outputs, (h_n, c_n)


def make_params(key, input_size, hidden_size, dtype=jnp.float32):
    """Uniform(-stdv, stdv) init, stdv = 1/sqrt(hidden_size), like reset_parameters.

    Returns fused weights: W_x (D,4H), W_h (H,4H), b (4H,), gate order i,f,o,c.
    """
    stdv = 1.0 / math.sqrt(hidden_size)
    ks = jax.random.split(key, 12)
    u = lambda k, shape: jax.random.uniform(k, shape, dtype, -stdv, stdv)
    W_x = jnp.concatenate([u(ks[0], (input_size, hidden_size)),
                           u(ks[1], (input_size, hidden_size)),
                           u(ks[2], (input_size, hidden_size)),
                           u(ks[3], (input_size, hidden_size))], axis=1)  # (D, 4H)
    W_h = jnp.concatenate([u(ks[4], (hidden_size, hidden_size)),
                           u(ks[5], (hidden_size, hidden_size)),
                           u(ks[6], (hidden_size, hidden_size)),
                           u(ks[7], (hidden_size, hidden_size))], axis=1)  # (H, 4H)
    b = jnp.concatenate([u(ks[8], (hidden_size,)),
                         u(ks[9], (hidden_size,)),
                         u(ks[10], (hidden_size,)),
                         u(ks[11], (hidden_size,))], axis=0)               # (4H,)
    return W_x, W_h, b


def _reference_forward(x, h0, c0, W_x, W_h, b):
    """Pure-JAX reference matching the PyTorch module semantics."""
    B, S, D = x.shape
    H = h0.shape[1]
    h, c = h0, c0
    outs = []
    for t in range(S):
        x_t = x[:, t, :]
        pre = x_t @ W_x + h @ W_h + b
        i_g = jax.nn.sigmoid(pre[:, :H])
        f_g = jax.nn.sigmoid(pre[:, H:2 * H])
        o_g = jax.nn.sigmoid(pre[:, 2 * H:3 * H])
        ct = jnp.tanh(pre[:, 3 * H:])
        c = f_g * c + i_g * ct
        h = o_g * jnp.tanh(c)
        outs.append(h)
    outputs = jnp.concatenate(outs, axis=0).reshape(B, S, H)
    return outputs, (h, c)


if __name__ == "__main__":
    key = jax.random.PRNGKey(0)
    batch, seq, input_size, hidden_size = 2, 8, 16, 32

    k_x, k_p = jax.random.split(key)
    x = jax.random.normal(k_x, (batch, seq, input_size), jnp.float32)
    h0 = jnp.zeros((batch, hidden_size), jnp.float32)
    c0 = jnp.zeros((batch, hidden_size), jnp.float32)
    W_x, W_h, b = make_params(k_p, input_size, hidden_size)

    outputs, (h_n, c_n) = lstm_layer_forward(x, h0, c0, W_x, W_h, b)
    jax.block_until_ready((outputs, h_n, c_n))

    ref_out, (ref_h, ref_c) = _reference_forward(x, h0, c0, W_x, W_h, b)
    assert outputs.shape == (batch, seq, hidden_size)
    assert h_n.shape == (batch, hidden_size) and c_n.shape == (batch, hidden_size)
    assert jnp.allclose(outputs, ref_out, rtol=1e-4, atol=1e-4)
    assert jnp.allclose(h_n, ref_h, rtol=1e-4, atol=1e-4)
    assert jnp.allclose(c_n, ref_c, rtol=1e-4, atol=1e-4)

    print("KERNEL_OK")
</pallas_src>

<mosaic_0001>
module attributes {stable_mosaic.version = 11 : i64} {
  func.func @_lstm_kernel(%arg0: i32, %arg1: memref<8x2x128xf32, #tpu.memory_space<vmem>>, %arg2: memref<2x32xf32, #tpu.memory_space<vmem>>, %arg3: memref<2x32xf32, #tpu.memory_space<vmem>>, %arg4: memref<32x128xf32, #tpu.memory_space<vmem>>, %arg5: memref<8x2x32xf32, #tpu.memory_space<vmem>>, %arg6: memref<2x32xf32, #tpu.memory_space<vmem>>, %arg7: memref<2x32xf32, #tpu.memory_space<vmem>>, %arg8: memref<2x32xf32, #tpu.memory_space<vmem>>, %arg9: memref<2x32xf32, #tpu.memory_space<vmem>>) attributes {dimension_semantics = [#tpu.dimension_semantics<arbitrary>], iteration_bounds = array<i64: 1>, scalar_prefetch = 0 : i64, scratch_operands = 2 : i64, tpu.core_type = #tpu.core_type<tc>, window_params = [{transform_indices = @transform_0, window_bounds = array<i64: 8, 2, 128>}, {pipeline_mode = #tpu.pipeline_mode<synchronous>, transform_indices = @transform_1, window_bounds = array<i64: 2, 32>}, {pipeline_mode = #tpu.pipeline_mode<synchronous>, transform_indices = @transform_2, window_bounds = array<i64: 2, 32>}, {pipeline_mode = #tpu.pipeline_mode<synchronous>, transform_indices = @transform_3, window_bounds = array<i64: 32, 128>}, {transform_indices = @transform_4, window_bounds = array<i64: 8, 2, 32>}, {pipeline_mode = #tpu.pipeline_mode<synchronous>, transform_indices = @transform_5, window_bounds = array<i64: 2, 32>}, {pipeline_mode = #tpu.pipeline_mode<synchronous>, transform_indices = @transform_6, window_bounds = array<i64: 2, 32>}]} {
    %c0_i32 = arith.constant 0 : i32
    %0 = arith.cmpi eq, %arg0, %c0_i32 : i32
    %1 = arith.extui %0 : i1 to i32
    %c0_i32_0 = arith.constant 0 : i32
    %2 = arith.cmpi ne, %1, %c0_i32_0 : i32
    scf.if %2 {
      %c0_60 = arith.constant 0 : index
      %c0_61 = arith.constant 0 : index
      %211 = vector.load %arg2[%c0_60, %c0_61] : memref<2x32xf32, #tpu.memory_space<vmem>>, vector<2x32xf32>
      %c0_62 = arith.constant 0 : index
      %c0_63 = arith.constant 0 : index
      %212 = vector.load %arg8[%c0_62, %c0_63] : memref<2x32xf32, #tpu.memory_space<vmem>>, vector<2x32xf32>
      tpu.vector_store %arg8[%c0_62, %c0_63], %211 {strides = array<i32>} : memref<2x32xf32, #tpu.memory_space<vmem>>, vector<2x32xf32>,
      %c0_64 = arith.constant 0 : index
      %c0_65 = arith.constant 0 : index
      %213 = vector.load %arg3[%c0_64, %c0_65] : memref<2x32xf32, #tpu.memory_space<vmem>>, vector<2x32xf32>
      %c0_66 = arith.constant 0 : index
      %c0_67 = arith.constant 0 : index
      %214 = vector.load %arg9[%c0_66, %c0_67] : memref<2x32xf32, #tpu.memory_space<vmem>>, vector<2x32xf32>
      tpu.vector_store %arg9[%c0_66, %c0_67], %213 {strides = array<i32>} : memref<2x32xf32, #tpu.memory_space<vmem>>, vector<2x32xf32>,
    } else {
    }
    %c0 = arith.constant 0 : index
    %c0_1 = arith.constant 0 : index
    %3 = vector.load %arg4[%c0, %c0_1] : memref<32x128xf32, #tpu.memory_space<vmem>>, vector<32x128xf32>
    %c0_2 = arith.constant 0 : index
    %c0_3 = arith.constant 0 : index
    %4 = vector.load %arg8[%c0_2, %c0_3] : memref<2x32xf32, #tpu.memory_space<vmem>>, vector<2x32xf32>
    %c0_4 = arith.constant 0 : index
    %c0_5 = arith.constant 0 : index
    %5 = vector.load %arg9[%c0_4, %c0_5] : memref<2x32xf32, #tpu.memory_space<vmem>>, vector<2x32xf32>
    %c0_i32_6 = arith.constant 0 : i32
    %6 = arith.index_cast %c0_i32_6 : i32 to index
    %c0_7 = arith.constant 0 : index
    %c0_8 = arith.constant 0 : index
    %7 = vector.load %arg1[%6, %c0_7, %c0_8] : memref<8x2x128xf32, #tpu.memory_space<vmem>>, vector<1x2x128xf32>
    %8 = vector.shape_cast %7 : vector<1x2x128xf32> to vector<2x128xf32>
    %cst = arith.constant dense<0.000000e+00> : vector<2x128xf32>
    %9 = tpu.matmul %4, %3, %cst {dimension_numbers = #tpu.dot_dimension_numbers<[1], [0], [0], [1], [0, 0, 1, 1], [], []>} : vector<2x32xf32>, vector<32x128xf32>, vector<2x128xf32> -> vector<2x128xf32>
    %10 = arith.addf %8, %9 : vector<2x128xf32>
    %11 = vector.extract_strided_slice %10 {offsets = [0, 0], sizes = [2, 96], strides = [1, 1]} : vector<2x128xf32> to vector<2x96xf32>
    %12 = arith.negf %11 : vector<2x96xf32>
    %13 = math.exp %12 : vector<2x96xf32>
    %cst_9 = arith.constant 1.000000e+00 : f32
    %14 = vector.broadcast %cst_9 : f32 to vector<2x96xf32>
    %15 = arith.addf %14, %13 : vector<2x96xf32>
    %16 = arith.divf %14, %15 : vector<2x96xf32>
    %17 = vector.extract_strided_slice %10 {offsets = [0, 96], sizes = [2, 32], strides = [1, 1]} : vector<2x128xf32> to vector<2x32xf32>
    %18 = math.tanh %17 : vector<2x32xf32>
    %19 = vector.extract_strided_slice %16 {offsets = [0, 0], sizes = [2, 32], strides = [1, 1]} : vector<2x96xf32> to vector<2x32xf32>
    %20 = vector.extract_strided_slice %16 {offsets = [0, 32], sizes = [2, 32], strides = [1, 1]} : vector<2x96xf32> to vector<2x32xf32>
    %21 = vector.extract_strided_slice %16 {offsets = [0, 64], sizes = [2, 32], strides = [1, 1]} : vector<2x96xf32> to vector<2x32xf32>
    %22 = arith.mulf %20, %5 : vector<2x32xf32>
    %23 = arith.mulf %19, %18 : vector<2x32xf32>
    %24 = arith.addf %22, %23 : vector<2x32xf32>
    %25 = math.tanh %24 : vector<2x32xf32>
    %26 = arith.mulf %21, %25 : vector<2x32xf32>
    %27 = arith.index_cast %c0_i32_6 : i32 to index
    %c0_10 = arith.constant 0 : index
    %c0_11 = arith.constant 0 : index
    %28 = vector.load %arg5[%27, %c0_10, %c0_11] : memref<8x2x32xf32, #tpu.memory_space<vmem>>, vector<1x2x32xf32>
    %29 = vector.shape_cast %28 : vector<1x2x32xf32> to vector<2x32xf32>
    %30 = vector.shape_cast %26 : vector<2x32xf32> to vector<1x2x32xf32>
    tpu.vector_store %arg5[%27, %c0_10, %c0_11], %30 {strides = array<i32>} : memref<8x2x32xf32, #tpu.memory_space<vmem>>, vector<1x2x32xf32>,
    %c1_i32 = arith.constant 1 : i32
    %31 = arith.index_cast %c1_i32 : i32 to index
    %c0_12 = arith.constant 0 : index
    %c0_13 = arith.constant 0 : index
    %32 = vector.load %arg1[%31, %c0_12, %c0_13] : memref<8x2x128xf32, #tpu.memory_space<vmem>>, vector<1x2x128xf32>
    %33 = vector.shape_cast %32 : vector<1x2x128xf32> to vector<2x128xf32>
    %cst_14 = arith.constant dense<0.000000e+00> : vector<2x128xf32>
    %34 = tpu.matmul %26, %3, %cst_14 {dimension_numbers = #tpu.dot_dimension_numbers<[1], [0], [0], [1], [0, 0, 1, 1], [], []>} : vector<2x32xf32>, vector<32x128xf32>, vector<2x128xf32> -> vector<2x128xf32>
    %35 = arith.addf %33, %34 : vector<2x128xf32>
    %36 = vector.extract_strided_slice %35 {offsets = [0, 0], sizes = [2, 96], strides = [1, 1]} : vector<2x128xf32> to vector<2x96xf32>
    %37 = arith.negf %36 : vector<2x96xf32>
    %38 = math.exp %37 : vector<2x96xf32>
    %cst_15 = arith.constant 1.000000e+00 : f32
    %39 = vector.broadcast %cst_15 : f32 to vector<2x96xf32>
    %40 = arith.addf %39, %38 : vector<2x96xf32>
    %41 = arith.divf %39, %40 : vector<2x96xf32>
    %42 = vector.extract_strided_slice %35 {offsets = [0, 96], sizes = [2, 32], strides = [1, 1]} : vector<2x128xf32> to vector<2x32xf32>
    %43 = math.tanh %42 : vector<2x32xf32>
    %44 = vector.extract_strided_slice %41 {offsets = [0, 0], sizes = [2, 32], strides = [1, 1]} : vector<2x96xf32> to vector<2x32xf32>
    %45 = vector.extract_strided_slice %41 {offsets = [0, 32], sizes = [2, 32], strides = [1, 1]} : vector<2x96xf32> to vector<2x32xf32>
    %46 = vector.extract_strided_slice %41 {offsets = [0, 64], sizes = [2, 32], strides = [1, 1]} : vector<2x96xf32> to vector<2x32xf32>
    %47 = arith.mulf %45, %24 : vector<2x32xf32>
    %48 = arith.mulf %44, %43 : vector<2x32xf32>
    %49 = arith.addf %47, %48 : vector<2x32xf32>
    %50 = math.tanh %49 : vector<2x32xf32>
    %51 = arith.mulf %46, %50 : vector<2x32xf32>
    %52 = arith.index_cast %c1_i32 : i32 to index
    %c0_16 = arith.constant 0 : index
    %c0_17 = arith.constant 0 : index
    %53 = vector.load %arg5[%52, %c0_16, %c0_17] : memref<8x2x32xf32, #tpu.memory_space<vmem>>, vector<1x2x32xf32>
    %54 = vector.shape_cast %53 : vector<1x2x32xf32> to vector<2x32xf32>
    %55 = vector.shape_cast %51 : vector<2x32xf32> to vector<1x2x32xf32>
    tpu.vector_store %arg5[%52, %c0_16, %c0_17], %55 {strides = array<i32>} : memref<8x2x32xf32, #tpu.memory_space<vmem>>, vector<1x2x32xf32>,
    %c2_i32 = arith.constant 2 : i32
    %56 = arith.index_cast %c2_i32 : i32 to index
    %c0_18 = arith.constant 0 : index
    %c0_19 = arith.constant 0 : index
    %57 = vector.load %arg1[%56, %c0_18, %c0_19] : memref<8x2x128xf32, #tpu.memory_space<vmem>>, vector<1x2x128xf32>
    %58 = vector.shape_cast %57 : vector<1x2x128xf32> to vector<2x128xf32>
    %cst_20 = arith.constant dense<0.000000e+00> : vector<2x128xf32>
    %59 = tpu.matmul %51, %3, %cst_20 {dimension_numbers = #tpu.dot_dimension_numbers<[1], [0], [0], [1], [0, 0, 1, 1], [], []>} : vector<2x32xf32>, vector<32x128xf32>, vector<2x128xf32> -> vector<2x128xf32>
    %60 = arith.addf %58, %59 : vector<2x128xf32>
    %61 = vector.extract_strided_slice %60 {offsets = [0, 0], sizes = [2, 96], strides = [1, 1]} : vector<2x128xf32> to vector<2x96xf32>
    %62 = arith.negf %61 : vector<2x96xf32>
    %63 = math.exp %62 : vector<2x96xf32>
    %cst_21 = arith.constant 1.000000e+00 : f32
    %64 = vector.broadcast %cst_21 : f32 to vector<2x96xf32>
    %65 = arith.addf %64, %63 : vector<2x96xf32>
    %66 = arith.divf %64, %65 : vector<2x96xf32>
    %67 = vector.extract_strided_slice %60 {offsets = [0, 96], sizes = [2, 32], strides = [1, 1]} : vector<2x128xf32> to vector<2x32xf32>
    %68 = math.tanh %67 : vector<2x32xf32>
    %69 = vector.extract_strided_slice %66 {offsets = [0, 0], sizes = [2, 32], strides = [1, 1]} : vector<2x96xf32> to vector<2x32xf32>
    %70 = vector.extract_strided_slice %66 {offsets = [0, 32], sizes = [2, 32], strides = [1, 1]} : vector<2x96xf32> to vector<2x32xf32>
    %71 = vector.extract_strided_slice %66 {offsets = [0, 64], sizes = [2, 32], strides = [1, 1]} : vector<2x96xf32> to vector<2x32xf32>
    %72 = arith.mulf %70, %49 : vector<2x32xf32>
    %73 = arith.mulf %69, %68 : vector<2x32xf32>
    %74 = arith.addf %72, %73 : vector<2x32xf32>
    %75 = math.tanh %74 : vector<2x32xf32>
    %76 = arith.mulf %71, %75 : vector<2x32xf32>
    %77 = arith.index_cast %c2_i32 : i32 to index
    %c0_22 = arith.constant 0 : index
    %c0_23 = arith.constant 0 : index
    %78 = vector.load %arg5[%77, %c0_22, %c0_23] : memref<8x2x32xf32, #tpu.memory_space<vmem>>, vector<1x2x32xf32>
    %79 = vector.shape_cast %78 : vector<1x2x32xf32> to vector<2x32xf32>
    %80 = vector.shape_cast %76 : vector<2x32xf32> to vector<1x2x32xf32>
    tpu.vector_store %arg5[%77, %c0_22, %c0_23], %80 {strides = array<i32>} : memref<8x2x32xf32, #tpu.memory_space<vmem>>, vector<1x2x32xf32>,
    %c3_i32 = arith.constant 3 : i32
    %81 = arith.index_cast %c3_i32 : i32 to index
    %c0_24 = arith.constant 0 : index
    %c0_25 = arith.constant 0 : index
    %82 = vector.load %arg1[%81, %c0_24, %c0_25] : memref<8x2x128xf32, #tpu.memory_space<vmem>>, vector<1x2x128xf32>
    %83 = vector.shape_cast %82 : vector<1x2x128xf32> to vector<2x128xf32>
    %cst_26 = arith.constant dense<0.000000e+00> : vector<2x128xf32>
    %84 = tpu.matmul %76, %3, %cst_26 {dimension_numbers = #tpu.dot_dimension_numbers<[1], [0], [0], [1], [0, 0, 1, 1], [], []>} : vector<2x32xf32>, vector<32x128xf32>, vector<2x128xf32> -> vector<2x128xf32>
    %85 = arith.addf %83, %84 : vector<2x128xf32>
    %86 = vector.extract_strided_slice %85 {offsets = [0, 0], sizes = [2, 96], strides = [1, 1]} : vector<2x128xf32> to vector<2x96xf32>
    %87 = arith.negf %86 : vector<2x96xf32>
    %88 = math.exp %87 : vector<2x96xf32>
    %cst_27 = arith.constant 1.000000e+00 : f32
    %89 = vector.broadcast %cst_27 : f32 to vector<2x96xf32>
    %90 = arith.addf %89, %88 : vector<2x96xf32>
    %91 = arith.divf %89, %90 : vector<2x96xf32>
    %92 = vector.extract_strided_slice %85 {offsets = [0, 96], sizes = [2, 32], strides = [1, 1]} : vector<2x128xf32> to vector<2x32xf32>
    %93 = math.tanh %92 : vector<2x32xf32>
    %94 = vector.extract_strided_slice %91 {offsets = [0, 0], sizes = [2, 32], strides = [1, 1]} : vector<2x96xf32> to vector<2x32xf32>
    %95 = vector.extract_strided_slice %91 {offsets = [0, 32], sizes = [2, 32], strides = [1, 1]} : vector<2x96xf32> to vector<2x32xf32>
    %96 = vector.extract_strided_slice %91 {offsets = [0, 64], sizes = [2, 32], strides = [1, 1]} : vector<2x96xf32> to vector<2x32xf32>
    %97 = arith.mulf %95, %74 : vector<2x32xf32>
    %98 = arith.mulf %94, %93 : vector<2x32xf32>
    %99 = arith.addf %97, %98 : vector<2x32xf32>
    %100 = math.tanh %99 : vector<2x32xf32>
    %101 = arith.mulf %96, %100 : vector<2x32xf32>
    %102 = arith.index_cast %c3_i32 : i32 to index
    %c0_28 = arith.constant 0 : index
    %c0_29 = arith.constant 0 : index
    %103 = vector.load %arg5[%102, %c0_28, %c0_29] : memref<8x2x32xf32, #tpu.memory_space<vmem>>, vector<1x2x32xf32>
    %104 = vector.shape_cast %103 : vector<1x2x32xf32> to vector<2x32xf32>
    %105 = vector.shape_cast %101 : vector<2x32xf32> to vector<1x2x32xf32>
    tpu.vector_store %arg5[%102, %c0_28, %c0_29], %105 {strides = array<i32>} : memref<8x2x32xf32, #tpu.memory_space<vmem>>, vector<1x2x32xf32>,
    %c4_i32 = arith.constant 4 : i32
    %106 = arith.index_cast %c4_i32 : i32 to index
    %c0_30 = arith.constant 0 : index
    %c0_31 = arith.constant 0 : index
    %107 = vector.load %arg1[%106, %c0_30, %c0_31] : memref<8x2x128xf32, #tpu.memory_space<vmem>>, vector<1x2x128xf32>
    %108 = vector.shape_cast %107 : vector<1x2x128xf32> to vector<2x128xf32>
    %cst_32 = arith.constant dense<0.000000e+00> : vector<2x128xf32>
    %109 = tpu.matmul %101, %3, %cst_32 {dimension_numbers = #tpu.dot_dimension_numbers<[1], [0], [0], [1], [0, 0, 1, 1], [], []>} : vector<2x32xf32>, vector<32x128xf32>, vector<2x128xf32> -> vector<2x128xf32>
    %110 = arith.addf %108, %109 : vector<2x128xf32>
    %111 = vector.extract_strided_slice %110 {offsets = [0, 0], sizes = [2, 96], strides = [1, 1]} : vector<2x128xf32> to vector<2x96xf32>
    %112 = arith.negf %111 : vector<2x96xf32>
    %113 = math.exp %112 : vector<2x96xf32>
    %cst_33 = arith.constant 1.000000e+00 : f32
    %114 = vector.broadcast %cst_33 : f32 to vector<2x96xf32>
    %115 = arith.addf %114, %113 : vector<2x96xf32>
    %116 = arith.divf %114, %115 : vector<2x96xf32>
    %117 = vector.extract_strided_slice %110 {offsets = [0, 96], sizes = [2, 32], strides = [1, 1]} : vector<2x128xf32> to vector<2x32xf32>
    %118 = math.tanh %117 : vector<2x32xf32>
    %119 = vector.extract_strided_slice %116 {offsets = [0, 0], sizes = [2, 32], strides = [1, 1]} : vector<2x96xf32> to vector<2x32xf32>
    %120 = vector.extract_strided_slice %116 {offsets = [0, 32], sizes = [2, 32], strides = [1, 1]} : vector<2x96xf32> to vector<2x32xf32>
    %121 = vector.extract_strided_slice %116 {offsets = [0, 64], sizes = [2, 32], strides = [1, 1]} : vector<2x96xf32> to vector<2x32xf32>
    %122 = arith.mulf %120, %99 : vector<2x32xf32>
    %123 = arith.mulf %119, %118 : vector<2x32xf32>
    %124 = arith.addf %122, %123 : vector<2x32xf32>
    %125 = math.tanh %124 : vector<2x32xf32>
    %126 = arith.mulf %121, %125 : vector<2x32xf32>
    %127 = arith.index_cast %c4_i32 : i32 to index
    %c0_34 = arith.constant 0 : index
    %c0_35 = arith.constant 0 : index
    %128 = vector.load %arg5[%127, %c0_34, %c0_35] : memref<8x2x32xf32, #tpu.memory_space<vmem>>, vector<1x2x32xf32>
    %129 = vector.shape_cast %128 : vector<1x2x32xf32> to vector<2x32xf32>
    %130 = vector.shape_cast %126 : vector<2x32xf32> to vector<1x2x32xf32>
    tpu.vector_store %arg5[%127, %c0_34, %c0_35], %130 {strides = array<i32>} : memref<8x2x32xf32, #tpu.memory_space<vmem>>, vector<1x2x32xf32>,
    %c5_i32 = arith.constant 5 : i32
    %131 = arith.index_cast %c5_i32 : i32 to index
    %c0_36 = arith.constant 0 : index
    %c0_37 = arith.constant 0 : index
    %132 = vector.load %arg1[%131, %c0_36, %c0_37] : memref<8x2x128xf32, #tpu.memory_space<vmem>>, vector<1x2x128xf32>
    %133 = vector.shape_cast %132 : vector<1x2x128xf32> to vector<2x128xf32>
    %cst_38 = arith.constant dense<0.000000e+00> : vector<2x128xf32>
    %134 = tpu.matmul %126, %3, %cst_38 {dimension_numbers = #tpu.dot_dimension_numbers<[1], [0], [0], [1], [0, 0, 1, 1], [], []>} : vector<2x32xf32>, vector<32x128xf32>, vector<2x128xf32> -> vector<2x128xf32>
    %135 = arith.addf %133, %134 : vector<2x128xf32>
    %136 = vector.extract_strided_slice %135 {offsets = [0, 0], sizes = [2, 96], strides = [1, 1]} : vector<2x128xf32> to vector<2x96xf32>
    %137 = arith.negf %136 : vector<2x96xf32>
    %138 = math.exp %137 : vector<2x96xf32>
    %cst_39 = arith.constant 1.000000e+00 : f32
    %139 = vector.broadcast %cst_39 : f32 to vector<2x96xf32>
    %140 = arith.addf %139, %138 : vector<2x96xf32>
    %141 = arith.divf %139, %140 : vector<2x96xf32>
    %142 = vector.extract_strided_slice %135 {offsets = [0, 96], sizes = [2, 32], strides = [1, 1]} : vector<2x128xf32> to vector<2x32xf32>
    %143 = math.tanh %142 : vector<2x32xf32>
    %144 = vector.extract_strided_slice %141 {offsets = [0, 0], sizes = [2, 32], strides = [1, 1]} : vector<2x96xf32> to vector<2x32xf32>
    %145 = vector.extract_strided_slice %141 {offsets = [0, 32], sizes = [2, 32], strides = [1, 1]} : vector<2x96xf32> to vector<2x32xf32>
    %146 = vector.extract_strided_slice %141 {offsets = [0, 64], sizes = [2, 32], strides = [1, 1]} : vector<2x96xf32> to vector<2x32xf32>
    %147 = arith.mulf %145, %124 : vector<2x32xf32>
    %148 = arith.mulf %144, %143 : vector<2x32xf32>
    %149 = arith.addf %147, %148 : vector<2x32xf32>
    %150 = math.tanh %149 : vector<2x32xf32>
    %151 = arith.mulf %146, %150 : vector<2x32xf32>
    %152 = arith.index_cast %c5_i32 : i32 to index
    %c0_40 = arith.constant 0 : index
    %c0_41 = arith.constant 0 : index
    %153 = vector.load %arg5[%152, %c0_40, %c0_41] : memref<8x2x32xf32, #tpu.memory_space<vmem>>, vector<1x2x32xf32>
    %154 = vector.shape_cast %153 : vector<1x2x32xf32> to vector<2x32xf32>
    %155 = vector.shape_cast %151 : vector<2x32xf32> to vector<1x2x32xf32>
    tpu.vector_store %arg5[%152, %c0_40, %c0_41], %155 {strides = array<i32>} : memref<8x2x32xf32, #tpu.memory_space<vmem>>, vector<1x2x32xf32>,
    %c6_i32 = arith.constant 6 : i32
    %156 = arith.index_cast %c6_i32 : i32 to index
    %c0_42 = arith.constant 0 : index
    %c0_43 = arith.constant 0 : index
    %157 = vector.load %arg1[%156, %c0_42, %c0_43] : memref<8x2x128xf32, #tpu.memory_space<vmem>>, vector<1x2x128xf32>
    %158 = vector.shape_cast %157 : vector<1x2x128xf32> to vector<2x128xf32>
    %cst_44 = arith.constant dense<0.000000e+00> : vector<2x128xf32>
    %159 = tpu.matmul %151, %3, %cst_44 {dimension_numbers = #tpu.dot_dimension_numbers<[1], [0], [0], [1], [0, 0, 1, 1], [], []>} : vector<2x32xf32>, vector<32x128xf32>, vector<2x128xf32> -> vector<2x128xf32>
    %160 = arith.addf %158, %159 : vector<2x128xf32>
    %161 = vector.extract_strided_slice %160 {offsets = [0, 0], sizes = [2, 96], strides = [1, 1]} : vector<2x128xf32> to vector<2x96xf32>
    %162 = arith.negf %161 : vector<2x96xf32>
    %163 = math.exp %162 : vector<2x96xf32>
    %cst_45 = arith.constant 1.000000e+00 : f32
    %164 = vector.broadcast %cst_45 : f32 to vector<2x96xf32>
    %165 = arith.addf %164, %163 : vector<2x96xf32>
    %166 = arith.divf %164, %165 : vector<2x96xf32>
    %167 = vector.extract_strided_slice %160 {offsets = [0, 96], sizes = [2, 32], strides = [1, 1]} : vector<2x128xf32> to vector<2x32xf32>
    %168 = math.tanh %167 : vector<2x32xf32>
    %169 = vector.extract_strided_slice %166 {offsets = [0, 0], sizes = [2, 32], strides = [1, 1]} : vector<2x96xf32> to vector<2x32xf32>
    %170 = vector.extract_strided_slice %166 {offsets = [0, 32], sizes = [2, 32], strides = [1, 1]} : vector<2x96xf32> to vector<2x32xf32>
    %171 = vector.extract_strided_slice %166 {offsets = [0, 64], sizes = [2, 32], strides = [1, 1]} : vector<2x96xf32> to vector<2x32xf32>
    %172 = arith.mulf %170, %149 : vector<2x32xf32>
    %173 = arith.mulf %169, %168 : vector<2x32xf32>
    %174 = arith.addf %172, %173 : vector<2x32xf32>
    %175 = math.tanh %174 : vector<2x32xf32>
    %176 = arith.mulf %171, %175 : vector<2x32xf32>
    %177 = arith.index_cast %c6_i32 : i32 to index
    %c0_46 = arith.constant 0 : index
    %c0_47 = arith.constant 0 : index
    %178 = vector.load %arg5[%177, %c0_46, %c0_47] : memref<8x2x32xf32, #tpu.memory_space<vmem>>, vector<1x2x32xf32>
    %179 = vector.shape_cast %178 : vector<1x2x32xf32> to vector<2x32xf32>
    %180 = vector.shape_cast %176 : vector<2x32xf32> to vector<1x2x32xf32>
    tpu.vector_store %arg5[%177, %c0_46, %c0_47], %180 {strides = array<i32>} : memref<8x2x32xf32, #tpu.memory_space<vmem>>, vector<1x2x32xf32>,
    %c7_i32 = arith.constant 7 : i32
    %181 = arith.index_cast %c7_i32 : i32 to index
    %c0_48 = arith.constant 0 : index
    %c0_49 = arith.constant 0 : index
    %182 = vector.load %arg1[%181, %c0_48, %c0_49] : memref<8x2x128xf32, #tpu.memory_space<vmem>>, vector<1x2x128xf32>
    %183 = vector.shape_cast %182 : vector<1x2x128xf32> to vector<2x128xf32>
    %cst_50 = arith.constant dense<0.000000e+00> : vector<2x128xf32>
    %184 = tpu.matmul %176, %3, %cst_50 {dimension_numbers = #tpu.dot_dimension_numbers<[1], [0], [0], [1], [0, 0, 1, 1], [], []>} : vector<2x32xf32>, vector<32x128xf32>, vector<2x128xf32> -> vector<2x128xf32>
    %185 = arith.addf %183, %184 : vector<2x128xf32>
    %186 = vector.extract_strided_slice %185 {offsets = [0, 0], sizes = [2, 96], strides = [1, 1]} : vector<2x128xf32> to vector<2x96xf32>
    %187 = arith.negf %186 : vector<2x96xf32>
    %188 = math.exp %187 : vector<2x96xf32>
    %cst_51 = arith.constant 1.000000e+00 : f32
    %189 = vector.broadcast %cst_51 : f32 to vector<2x96xf32>
    %190 = arith.addf %189, %188 : vector<2x96xf32>
    %191 = arith.divf %189, %190 : vector<2x96xf32>
    %192 = vector.extract_strided_slice %185 {offsets = [0, 96], sizes = [2, 32], strides = [1, 1]} : vector<2x128xf32> to vector<2x32xf32>
    %193 = math.tanh %192 : vector<2x32xf32>
    %194 = vector.extract_strided_slice %191 {offsets = [0, 0], sizes = [2, 32], strides = [1, 1]} : vector<2x96xf32> to vector<2x32xf32>
    %195 = vector.extract_strided_slice %191 {offsets = [0, 32], sizes = [2, 32], strides = [1, 1]} : vector<2x96xf32> to vector<2x32xf32>
    %196 = vector.extract_strided_slice %191 {offsets = [0, 64], sizes = [2, 32], strides = [1, 1]} : vector<2x96xf32> to vector<2x32xf32>
    %197 = arith.mulf %195, %174 : vector<2x32xf32>
    %198 = arith.mulf %194, %193 : vector<2x32xf32>
    %199 = arith.addf %197, %198 : vector<2x32xf32>
    %200 = math.tanh %199 : vector<2x32xf32>
    %201 = arith.mulf %196, %200 : vector<2x32xf32>
    %202 = arith.index_cast %c7_i32 : i32 to index
    %c0_52 = arith.constant 0 : index
    %c0_53 = arith.constant 0 : index
    %203 = vector.load %arg5[%202, %c0_52, %c0_53] : memref<8x2x32xf32, #tpu.memory_space<vmem>>, vector<1x2x32xf32>
    %204 = vector.shape_cast %203 : vector<1x2x32xf32> to vector<2x32xf32>
    %205 = vector.shape_cast %201 : vector<2x32xf32> to vector<1x2x32xf32>
    tpu.vector_store %arg5[%202, %c0_52, %c0_53], %205 {strides = array<i32>} : memref<8x2x32xf32, #tpu.memory_space<vmem>>, vector<1x2x32xf32>,
    %c8_i32 = arith.constant 8 : i32
    %c0_54 = arith.constant 0 : index
    %c0_55 = arith.constant 0 : index
    %206 = vector.load %arg8[%c0_54, %c0_55] : memref<2x32xf32, #tpu.memory_space<vmem>>, vector<2x32xf32>
    tpu.vector_store %arg8[%c0_54, %c0_55], %201 {strides = array<i32>} : memref<2x32xf32, #tpu.memory_space<vmem>>, vector<2x32xf32>,
    %c0_56 = arith.constant 0 : index
    %c0_57 = arith.constant 0 : index
    %207 = vector.load %arg9[%c0_56, %c0_57] : memref<2x32xf32, #tpu.memory_space<vmem>>, vector<2x32xf32>
    tpu.vector_store %arg9[%c0_56, %c0_57], %199 {strides = array<i32>} : memref<2x32xf32, #tpu.memory_space<vmem>>, vector<2x32xf32>,
    %c0_i32_58 = arith.constant 0 : i32
    %208 = arith.cmpi eq, %arg0, %c0_i32_58 : i32
    %209 = arith.extui %208 : i1 to i32
    %c0_i32_59 = arith.constant 0 : i32
    %210 = arith.cmpi ne, %209, %c0_i32_59 : i32
    scf.if %210 {
      %c0_60 = arith.constant 0 : index
      %c0_61 = arith.constant 0 : index
      %211 = vector.load %arg6[%c0_60, %c0_61] : memref<2x32xf32, #tpu.memory_space<vmem>>, vector<2x32xf32>
      tpu.vector_store %arg6[%c0_60, %c0_61], %201 {strides = array<i32>} : memref<2x32xf32, #tpu.memory_space<vmem>>, vector<2x32xf32>,
      %c0_62 = arith.constant 0 : index
      %c0_63 = arith.constant 0 : index
      %212 = vector.load %arg7[%c0_62, %c0_63] : memref<2x32xf32, #tpu.memory_space<vmem>>, vector<2x32xf32>
      tpu.vector_store %arg7[%c0_62, %c0_63], %199 {strides = array<i32>} : memref<2x32xf32, #tpu.memory_space<vmem>>, vector<2x32xf32>,
    } else {
    }
    return
  }
  func.func @transform_0(%arg0: i32) -> (i32, i32, i32) {
    %c0_i32 = arith.constant 0 : i32
    %c0_i32_0 = arith.constant 0 : i32
    %c0_i32_1 = arith.constant 0 : i32
    return %arg0, %c0_i32, %c0_i32_0 : i32, i32, i32
  }
  func.func @transform_1(%arg0: i32) -> (i32, i32) {
    %c0_i32 = arith.constant 0 : i32
    %c0_i32_0 = arith.constant 0 : i32
    %c0_i32_1 = arith.constant 0 : i32
    return %c0_i32, %c0_i32_0 : i32, i32
  }
  func.func @transform_2(%arg0: i32) -> (i32, i32) {
    %c0_i32 = arith.constant 0 : i32
    %c0_i32_0 = arith.constant 0 : i32
    %c0_i32_1 = arith.constant 0 : i32
    return %c0_i32, %c0_i32_0 : i32, i32
  }
  func.func @transform_3(%arg0: i32) -> (i32, i32) {
    %c0_i32 = arith.constant 0 : i32
    %c0_i32_0 = arith.constant 0 : i32
    %c0_i32_1 = arith.constant 0 : i32
    return %c0_i32, %c0_i32_0 : i32, i32
  }
  func.func @transform_4(%arg0: i32) -> (i32, i32, i32) {
    %c0_i32 = arith.constant 0 : i32
    %c0_i32_0 = arith.constant 0 : i32
    %c0_i32_1 = arith.constant 0 : i32
    return %arg0, %c0_i32, %c0_i32_0 : i32, i32, i32
  }
  func.func @transform_5(%arg0: i32) -> (i32, i32) {
    %c0_i32 = arith.constant 0 : i32
    %c0_i32_0 = arith.constant 0 : i32
    %c0_i32_1 = arith.constant 0 : i32
    return %c0_i32, %c0_i32_0 : i32, i32
  }
  func.func @transform_6(%arg0: i32) -> (i32, i32) {
    %c0_i32 = arith.constant 0 : i32
    %c0_i32_0 = arith.constant 0 : i32
    %c0_i32_1 = arith.constant 0 : i32
    return %c0_i32, %c0_i32_0 : i32, i32
  }
}

</mosaic_0001>

<bundles_post_ra>
// kernel: lstm_layer_forward.1
= control target key start
LH: loop header
LB: loop body
LE: loop exit
PB: predicated region body
PF: predicated region fallthrough
CT: control target
= control target key end

     0   :  { %12 = vsyncpa [#allocation5], 0  ;;  %v1279_v3 = vmov 0.0|0.0   ;;  %vm1280_vm0 = vmmov 0   ;;  %v1281_v6 = vmov 0.0   ;;  %vm27_vm1 = vcmask 254976   ;;  %s1525_s0 = inlined_call_operand.vmem [shape: f32[8,2,128], index: 0, kind: input, shape index: {}]   ;;  %s1526_s1 = inlined_call_operand.vmem [shape: f32[2,32], index: 1, kind: input, shape index: {}]   ;;  %s1527_s2 = inlined_call_operand.vmem [shape: f32[2,32], index: 2, kind: input, shape index: {}]   ;;  %s1528_s3 = inlined_call_operand.vmem [shape: f32[32,128], index: 3, kind: input, shape index: {}]   ;;  %s1529_s4 = inlined_call_operand.hbm [shape: f32[8,2,32], index: 4, kind: output, shape index: {0}]   ;;  %s1530_s5 = inlined_call_operand.hbm [shape: f32[2,32], index: 5, kind: output, shape index: {1}]   ;;  %s1531_s6 = inlined_call_operand.hbm [shape: f32[2,32], index: 6, kind: output, shape index: {2}]  }
   0x1   :  { %v31_v0 = vld [vmem:[%s1528_s3] sm:$0xff]  ;;  %v32_v1 = vld [vmem:[%s1528_s3 + $0x8] sm:$0xff]  ;;  %v33_v2 = vld [vmem:[%s1528_s3 + $0x10] sm:$0xff]  ;;  %1087 = vmatprep.subr.bf16.mxu0 %v1279_v3  ;;  %1007 = vmatprep.mubr.msk.f32.mxu0 %vm1280_vm0, %v1281_v6 }
   0x2   :  { %v1334_v4 = vpack.c.bf16 %v32_v1, %v31_v0  ;;  %v34_v5 = vld [vmem:[%s1528_s3 + $0x18] sm:$0xff]  ;;  %v26_v7 = vld [vmem:[%s1526_s1] sm:$0x3]  ;;  %1093 = vmatprep.subr.bf16.mxu1 %v1279_v3  ;;  %1018 = vmatprep.mubr.msk.f32.mxu1 %vm1280_vm0, %v1281_v6 }
   0x3   :  { %28 = vst.msk [vmem:[#allocation2] sm:$0x3] %vm27_vm1, %v26_v7 }
   0x4   :  { %13 = vsyncpa [#allocation7], 0  ;;  %1089 = vmatpush3.bf16.msra.mxu0 %v1334_v4  ;;  %v1349_v8 = vpack.c.bf16 %v34_v5, %v33_v2  ;;  %1095 = vmatpush3.bf16.msra.mxu1 %v1334_v4  ;;  %vm38_vm2 = vcmask 261120   ;;  %v29_v10 = vld [vmem:[%s1527_s2] sm:$0x3]  ;;  %s1282_s9 = smov 32  }
   0x5   :  { %1090 = vmatprep.subr.bf16.mxu0 %v1279_v3  ;;  %1096 = vmatprep.subr.bf16.mxu1 %v1279_v3  ;;  %30 = vst.msk [vmem:[#allocation3] sm:$0x3] %vm27_vm1, %v29_v10  ;;  %v37_v11 = vld [vmem:[%s1525_s0] sm:$0x3]  ;;  %s1283_s2 = smov 64   ;;  %s1285_s24 = smov [#allocation6]  }
   0x6   :  { %v938_v31 = vld [vmem:[%s1525_s0 + $0x2] sm:$0x3]  ;;  %v941_v49 = vld [vmem:[%s1525_s0 + $0x4] sm:$0x3]  ;;  %v944_v5 = vld [vmem:[%s1525_s0 + $0x6] sm:$0x3] }
   0x7   :  { %s911_s25 = sshll.u32 %s1285_s24, 4  ;;  %s1286_s26 = smov [#allocation4]   ;;  %s912_s25 = int_to_ptr.vmem [resolvable:$true] %s911_s25 }
   0x8   :  { %1092 = vmatpush3.bf16.msra.mxu0 %v1349_v8  ;;  %1098 = vmatpush3.bf16.msra.mxu1 %v1349_v8  ;;  %s898_s27 = sshll.u32 %s1286_s26, 4  ;;  %s1287_s28 = smov [#allocation8]   ;;  %s1470_s27 = int_to_ptr.vmem [resolvable:$true] %s898_s27 }
   0x9   :  { %1099 = vmatprep.subr.bf16.mxu0 %v1279_v3  ;;  %1105 = vmatprep.subr.bf16.mxu1 %v1279_v3  ;;  %s921_s29 = sshll.u32 %s1287_s28, 4  ;;  %s1209_s30 = scalar_lea.vmem %s912_s25, 32  ;;  %s1475_s29 = int_to_ptr.vmem [resolvable:$true] %s921_s29 }
   0xa   :  { %v35_v9 = vld [vmem:[#allocation2] sm:$0x3]  ;;  %p1210_p0 = scmp.ne.s32.totalorder %s912_s25, %s1209_s30  ;;  %p1214_p1 = scmp.lt.s32.totalorder %s912_s25, %s912_s25 }
   0xb   :  { %1008 = vmatmul.mubr.msk.f32.vlgmr.msra.gmra.mrb[0].mxu0 %vm38_vm2, %v35_v9  ;;  %p1215_p2 = scmp.lt.s32.totalorder %s1209_s30, %s1209_s30 }
   0xc   :  { %1101 = vmatpush3.bf16.msra.mxu0 %v1334_v4  ;;  %1029 = vmatprep.mubr.msk.f32.mxu0 %vm1280_vm0, %v1281_v6  ;;  %v36_v16 = vld [vmem:[#allocation3] sm:$0x3] }
   0xd   :  { %1102 = vmatprep.subr.bf16.mxu0 %v1279_v3  ;;  %p1216_p3 = por %p1215_p2, %p1214_p1 }
   0xf   :  { %p1217_p4 = pnand %p1216_p3, %p1210_p0 }
  0x10   :  { %1104 = vmatpush3.bf16.msra.mxu0 %v1349_v8 }
  0x11   :  { %1111 = vmatprep.subr.bf16.mxu0 %v1279_v3 }
  0xde   :  { %v108_v12 = vpop.f32.mrb[0].mxu0 }
  0xdf   :  { %v112_v13 = vadd.f32 %v108_v12, %v37_v11  ;;  %v1009_v14 = vpop.f32.mrb[1].mxu0 }
  0xe1   :  { %1145 = vtanh.f32 %v112_v13  ;;  %v937_v17 = vmul.f32 -1.442695, %v112_v13 }
  0xe3   :  { %1147 = vpow2.f32 %v937_v17 }
  0xeb   :  { %v1146_v15 = vpop.eup %1145 }
  0xec   :  { %126 = vrot.lane.b32.xlu0 %v1146_v15, %s1282_s9 }
  0xed   :  { %v1148_v18 = vpop.eup %1147 }
  0xee   :  { %v116_v19 = vadd.f32 1.0, %v1148_v18 }
  0xf0   :  { %121 = vrot.lane.b32.xlu0 %v36_v16, %s1282_s9  ;;  %1149 = vrcp.f32 %v116_v19 }
  0xfa   :  { %v1150_v20 = vpop.eup %1149 }
 0x15e   :  { %v127_v21 = vpop.permute.xlu0 %126 }
 0x15f   :  { %v129_v22 = vmul.f32 %v1150_v20, %v127_v21 }
 0x161   :  { %131 = vrot.lane.b32.xlu1 %v129_v22, %s1282_s9 }
 0x162   :  { %v122_v23 = vpop.permute.xlu0 %121 }
 0x163   :  { %v124_v24 = vmul.f32 %v1150_v20, %v122_v23 }
 0x1d3   :  { %v132_v25 = vpop.permute.xlu1 %131 }
 0x1d4   :  { %v134_v26 = vadd.f32 %v132_v25, %v124_v24  ;;  %v947_v25 = vld [vmem:[%s1525_s0 + $0x8] sm:$0x3] }
 0x1d6   :  { %1151 = vtanh.f32 %v134_v26 }
 0x1e0   :  { %v1152_v27 = vpop.eup %1151 }
 0x1e1   :  { %137 = vrot.lane.b32.xlu1 %v1152_v27, %s1282_s9 }
 0x253   :  { %v138_v28 = vpop.permute.xlu1 %137 }
 0x254   :  { %v140_v29 = vmul.f32 %v1150_v20, %v138_v28 }
 0x256   :  { %142 = vrot.lane.b32.xlu0 %v140_v29, %s1283_s2 }
 0x2c8   :  { %v143_v30 = vpop.permute.xlu0 %142 }
 0x2c9   :  { %146 = vst.msk [vmem:[#allocation4] sm:$0x3] %vm27_vm1, %v143_v30  ;;  %1019 = vmatmul.mubr.msk.f32.vlgmr.msra.gmra.mrb[0].mxu1 %vm38_vm2, %v143_v30 }
 0x2ca   :  { %1107 = vmatpush3.bf16.msra.mxu1 %v1334_v4  ;;  %1040 = vmatprep.mubr.msk.f32.mxu1 %vm1280_vm0, %v1281_v6 }
 0x2cb   :  { %1108 = vmatprep.subr.bf16.mxu1 %v1279_v3 }
 0x2ce   :  { %1110 = vmatpush3.bf16.msra.mxu1 %v1349_v8 }
 0x2cf   :  { %1117 = vmatprep.subr.bf16.mxu1 %v1279_v3 }
 0x39c   :  { %v217_v32 = vpop.f32.mrb[0].mxu1 }
 0x39d   :  { %v221_v33 = vadd.f32 %v938_v31, %v217_v32  ;;  %v1020_v34 = vpop.f32.mrb[1].mxu1 }
 0x39f   :  { %1153 = vtanh.f32 %v221_v33  ;;  %v940_v36 = vmul.f32 -1.442695, %v221_v33 }
 0x3a1   :  { %1155 = vpow2.f32 %v940_v36 }
 0x3a9   :  { %v1154_v35 = vpop.eup %1153 }
 0x3aa   :  { %231 = vrot.lane.b32.xlu1 %v1154_v35, %s1282_s9 }
 0x3ab   :  { %v1156_v37 = vpop.eup %1155 }
 0x3ac   :  { %v225_v38 = vadd.f32 1.0, %v1156_v37 }
 0x3ae   :  { %1157 = vrcp.f32 %v225_v38 }
 0x3b8   :  { %v1158_v39 = vpop.eup %1157 }
 0x3b9   :  { %v229_v42 = vmul.f32 %v1158_v39, %v134_v26 }
 0x41c   :  { %v232_v40 = vpop.permute.xlu1 %231 }
 0x41d   :  { %v234_v41 = vmul.f32 %v1158_v39, %v232_v40 }
 0x41f   :  { %236 = vrot.lane.b32.xlu0 %v234_v41, %s1282_s9 }
 0x491   :  { %v237_v43 = vpop.permute.xlu0 %236 }
 0x492   :  { %v239_v44 = vadd.f32 %v237_v43, %v229_v42  ;;  %v950_v43 = vld [vmem:[%s1525_s0 + $0xa] sm:$0x3] }
 0x494   :  { %1159 = vtanh.f32 %v239_v44 }
 0x49e   :  { %v1160_v45 = vpop.eup %1159 }
 0x49f   :  { %242 = vrot.lane.b32.xlu1 %v1160_v45, %s1282_s9 }
 0x511   :  { %v243_v46 = vpop.permute.xlu1 %242 }
 0x512   :  { %v245_v47 = vmul.f32 %v1158_v39, %v243_v46 }
 0x514   :  { %247 = vrot.lane.b32.xlu0 %v245_v47, %s1283_s2 }
 0x586   :  { %v248_v48 = vpop.permute.xlu0 %247 }
 0x587   :  { %251 = vst.msk [vmem:[#allocation4 + $0x2] sm:$0x3] %vm27_vm1, %v248_v48  ;;  %1030 = vmatmul.mubr.msk.f32.vlgmr.msra.gmra.mrb[2].mxu0 %vm38_vm2, %v248_v48 }
 0x588   :  { %1113 = vmatpush3.bf16.msra.mxu0 %v1334_v4  ;;  %1051 = vmatprep.mubr.msk.f32.mxu0 %vm1280_vm0, %v1281_v6 }
 0x589   :  { %1114 = vmatprep.subr.bf16.mxu0 %v1279_v3 }
 0x58c   :  { %1116 = vmatpush3.bf16.msra.mxu0 %v1349_v8 }
 0x58d   :  { %1123 = vmatprep.subr.bf16.mxu0 %v1279_v3 }
 0x65a   :  { %v322_v50 = vpop.f32.mrb[2].mxu0 }
 0x65b   :  { %v326_v51 = vadd.f32 %v941_v49, %v322_v50  ;;  %v1031_v52 = vpop.f32.mrb[3].mxu0 }
 0x65d   :  { %1161 = vtanh.f32 %v326_v51  ;;  %v943_v54 = vmul.f32 -1.442695, %v326_v51 }
 0x65f   :  { %1163 = vpow2.f32 %v943_v54 }
 0x667   :  { %v1162_v53 = vpop.eup %1161 }
 0x668   :  { %336 = vrot.lane.b32.xlu1 %v1162_v53, %s1282_s9 }
 0x669   :  { %v1164_v55 = vpop.eup %1163 }
 0x66a   :  { %v330_v56 = vadd.f32 1.0, %v1164_v55 }
 0x66c   :  { %1165 = vrcp.f32 %v330_v56 }
 0x676   :  { %v1166_v57 = vpop.eup %1165 }
 0x677   :  { %v334_v60 = vmul.f32 %v1166_v57, %v239_v44 }
 0x6da   :  { %v337_v58 = vpop.permute.xlu1 %336 }
 0x6db   :  { %v339_v59 = vmul.f32 %v1166_v57, %v337_v58 }
 0x6dd   :  { %341 = vrot.lane.b32.xlu0 %v339_v59, %s1282_s9 }
 0x74f   :  { %v342_v61 = vpop.permute.xlu0 %341 }
 0x750   :  { %v344_v62 = vadd.f32 %v342_v61, %v334_v60 }
 0x752   :  { %1167 = vtanh.f32 %v344_v62 }
 0x75c   :  { %v1168_v63 = vpop.eup %1167 }
 0x75d   :  { %347 = vrot.lane.b32.xlu1 %v1168_v63, %s1282_s9 }
 0x7cf   :  { %v348_v0 = vpop.permute.xlu1 %347 }
 0x7d0   :  { %v350_v1 = vmul.f32 %v1166_v57, %v348_v0  ;;  %v953_v57 = vld [vmem:[%s1525_s0 + $0xc] sm:$0x3] }
 0x7d2   :  { %352 = vrot.lane.b32.xlu0 %v350_v1, %s1283_s2 }
 0x844   :  { %v353_v2 = vpop.permute.xlu0 %352 }
 0x845   :  { %356 = vst.msk [vmem:[#allocation4 + $0x4] sm:$0x3] %vm27_vm1, %v353_v2  ;;  %1041 = vmatmul.mubr.msk.f32.vlgmr.msra.gmra.mrb[2].mxu1 %vm38_vm2, %v353_v2 }
 0x846   :  { %1119 = vmatpush3.bf16.msra.mxu1 %v1334_v4  ;;  %1062 = vmatprep.mubr.msk.f32.mxu1 %vm1280_vm0, %v1281_v6 }
 0x847   :  { %1120 = vmatprep.subr.bf16.mxu1 %v1279_v3 }
 0x84a   :  { %1122 = vmatpush3.bf16.msra.mxu1 %v1349_v8 }
 0x84b   :  { %1129 = vmatprep.subr.bf16.mxu1 %v1279_v3 }
 0x918   :  { %v427_v7 = vpop.f32.mrb[2].mxu1 }
 0x919   :  { %v431_v9 = vadd.f32 %v944_v5, %v427_v7  ;;  %v1042_v10 = vpop.f32.mrb[3].mxu1 }
 0x91b   :  { %1169 = vtanh.f32 %v431_v9  ;;  %v946_v12 = vmul.f32 -1.442695, %v431_v9 }
 0x91d   :  { %1171 = vpow2.f32 %v946_v12 }
 0x925   :  { %v1170_v11 = vpop.eup %1169 }
 0x926   :  { %441 = vrot.lane.b32.xlu1 %v1170_v11, %s1282_s9 }
 0x927   :  { %v1172_v13 = vpop.eup %1171 }
 0x928   :  { %v435_v14 = vadd.f32 1.0, %v1172_v13 }
 0x92a   :  { %1173 = vrcp.f32 %v435_v14 }
 0x934   :  { %v1174_v15 = vpop.eup %1173 }
 0x935   :  { %v439_v18 = vmul.f32 %v1174_v15, %v344_v62 }
 0x998   :  { %v442_v16 = vpop.permute.xlu1 %441 }
 0x999   :  { %v444_v17 = vmul.f32 %v1174_v15, %v442_v16 }
 0x99b   :  { %446 = vrot.lane.b32.xlu0 %v444_v17, %s1282_s9 }
 0xa0d   :  { %v447_v19 = vpop.permute.xlu0 %446 }
 0xa0e   :  { %v449_v20 = vadd.f32 %v447_v19, %v439_v18 }
 0xa10   :  { %1175 = vtanh.f32 %v449_v20 }
 0xa1a   :  { %v1176_v21 = vpop.eup %1175 }
 0xa1b   :  { %452 = vrot.lane.b32.xlu1 %v1176_v21, %s1282_s9 }
 0xa8d   :  { %v453_v22 = vpop.permute.xlu1 %452 }
 0xa8e   :  { %v455_v23 = vmul.f32 %v1174_v15, %v453_v22  ;;  %v956_v15 = vld [vmem:[%s1525_s0 + $0xe] sm:$0x3]  ;;  %s1284_s0 = smov 96  }
 0xa90   :  { %457 = vrot.lane.b32.xlu0 %v455_v23, %s1283_s2 }
 0xb02   :  { %v458_v24 = vpop.permute.xlu0 %457 }
 0xb03   :  { %461 = vst.msk [vmem:[#allocation4 + $0x6] sm:$0x3] %vm27_vm1, %v458_v24  ;;  %1052 = vmatmul.mubr.msk.f32.vlgmr.msra.gmra.mrb[4].mxu0 %vm38_vm2, %v458_v24 }
 0xb04   :  { %1125 = vmatpush3.bf16.msra.mxu0 %v1334_v4  ;;  %1073 = vmatprep.mubr.msk.f32.mxu0 %vm1280_vm0, %v1281_v6 }
 0xb05   :  { %1126 = vmatprep.subr.bf16.mxu0 %v1279_v3 }
 0xb08   :  { %1128 = vmatpush3.bf16.msra.mxu0 %v1349_v8 }
 0xbd6   :  { %v532_v26 = vpop.f32.mrb[4].mxu0 }
 0xbd7   :  { %v536_v27 = vadd.f32 %v947_v25, %v532_v26  ;;  %v1053_v28 = vpop.f32.mrb[5].mxu0 }
 0xbd9   :  { %1177 = vtanh.f32 %v536_v27  ;;  %v949_v30 = vmul.f32 -1.442695, %v536_v27 }
 0xbdb   :  { %1179 = vpow2.f32 %v949_v30 }
 0xbe3   :  { %v1178_v29 = vpop.eup %1177 }
 0xbe4   :  { %546 = vrot.lane.b32.xlu1 %v1178_v29, %s1282_s9 }
 0xbe5   :  { %v1180_v31 = vpop.eup %1179 }
 0xbe6   :  { %v540_v32 = vadd.f32 1.0, %v1180_v31 }
 0xbe8   :  { %1181 = vrcp.f32 %v540_v32 }
 0xbf2   :  { %v1182_v33 = vpop.eup %1181 }
 0xbf3   :  { %v544_v36 = vmul.f32 %v1182_v33, %v449_v20 }
 0xc56   :  { %v547_v34 = vpop.permute.xlu1 %546 }
 0xc57   :  { %v549_v35 = vmul.f32 %v1182_v33, %v547_v34 }
 0xc59   :  { %551 = vrot.lane.b32.xlu0 %v549_v35, %s1282_s9 }
 0xccb   :  { %v552_v37 = vpop.permute.xlu0 %551 }
 0xccc   :  { %v554_v38 = vadd.f32 %v552_v37, %v544_v36 }
 0xcce   :  { %1183 = vtanh.f32 %v554_v38 }
 0xcd8   :  { %v1184_v39 = vpop.eup %1183 }
 0xcd9   :  { %557 = vrot.lane.b32.xlu1 %v1184_v39, %s1282_s9 }
 0xd4b   :  { %v558_v40 = vpop.permute.xlu1 %557 }
 0xd4c   :  { %v560_v41 = vmul.f32 %v1182_v33, %v558_v40 }
 0xd4e   :  { %562 = vrot.lane.b32.xlu0 %v560_v41, %s1283_s2 }
 0xdc0   :  { %v563_v42 = vpop.permute.xlu0 %562 }
 0xdc1   :  { %566 = vst.msk [vmem:[#allocation4 + $0x8] sm:$0x3] %vm27_vm1, %v563_v42  ;;  %1063 = vmatmul.mubr.msk.f32.vlgmr.msra.gmra.mrb[4].mxu1 %vm38_vm2, %v563_v42 }
 0xdc2   :  { %1131 = vmatpush3.bf16.msra.mxu1 %v1334_v4  ;;  %1084 = vmatprep.mubr.msk.f32.mxu1 %vm1280_vm0, %v1281_v6 }
 0xdc3   :  { %1132 = vmatprep.subr.bf16.mxu1 %v1279_v3 }
 0xdc6   :  { %1134 = vmatpush3.bf16.msra.mxu1 %v1349_v8 }
 0xe94   :  { %v637_v44 = vpop.f32.mrb[4].mxu1 }
 0xe95   :  { %v641_v45 = vadd.f32 %v950_v43, %v637_v44  ;;  %v1064_v46 = vpop.f32.mrb[5].mxu1 }
 0xe97   :  { %1185 = vtanh.f32 %v641_v45  ;;  %v952_v48 = vmul.f32 -1.442695, %v641_v45 }
 0xe99   :  { %1187 = vpow2.f32 %v952_v48 }
 0xea1   :  { %v1186_v47 = vpop.eup %1185 }
 0xea2   :  { %651 = vrot.lane.b32.xlu1 %v1186_v47, %s1282_s9 }
 0xea3   :  { %v1188_v4 = vpop.eup %1187 }
 0xea4   :  { %v645_v49 = vadd.f32 1.0, %v1188_v4 }
 0xea6   :  { %1189 = vrcp.f32 %v645_v49 }
 0xeb0   :  { %v1190_v6 = vpop.eup %1189 }
 0xeb1   :  { %v649_v8 = vmul.f32 %v1190_v6, %v554_v38 }
 0xf14   :  { %v652_v3 = vpop.permute.xlu1 %651 }
 0xf15   :  { %v654_v50 = vmul.f32 %v1190_v6, %v652_v3 }
 0xf17   :  { %656 = vrot.lane.b32.xlu0 %v654_v50, %s1282_s9 }
 0xf89   :  { %v657_v51 = vpop.permute.xlu0 %656 }
 0xf8a   :  { %v659_v52 = vadd.f32 %v657_v51, %v649_v8 }
 0xf8c   :  { %1191 = vtanh.f32 %v659_v52 }
 0xf96   :  { %v1192_v53 = vpop.eup %1191 }
 0xf97   :  { %662 = vrot.lane.b32.xlu1 %v1192_v53, %s1282_s9 }
0x1009   :  { %v663_v54 = vpop.permute.xlu1 %662 }
0x100a   :  { %v665_v55 = vmul.f32 %v1190_v6, %v663_v54 }
0x100c   :  { %667 = vrot.lane.b32.xlu0 %v665_v55, %s1283_s2 }
0x107e   :  { %v668_v56 = vpop.permute.xlu0 %667 }
0x107f   :  { %671 = vst.msk [vmem:[#allocation4 + $0xa] sm:$0x3] %vm27_vm1, %v668_v56  ;;  %1074 = vmatmul.mubr.msk.f32.vlgmr.msra.gmra.mrb[6].mxu0 %vm38_vm2, %v668_v56 }
0x1152   :  { %v742_v58 = vpop.f32.mrb[6].mxu0 }
0x1153   :  { %v746_v59 = vadd.f32 %v953_v57, %v742_v58  ;;  %v1075_v60 = vpop.f32.mrb[7].mxu0 }
0x1155   :  { %1193 = vtanh.f32 %v746_v59  ;;  %v955_v62 = vmul.f32 -1.442695, %v746_v59 }
0x1157   :  { %1195 = vpow2.f32 %v955_v62 }
0x115f   :  { %v1194_v61 = vpop.eup %1193 }
0x1160   :  { %756 = vrot.lane.b32.xlu1 %v1194_v61, %s1282_s9 }
0x1161   :  { %v1196_v63 = vpop.eup %1195 }
0x1162   :  { %v750_v0 = vadd.f32 1.0, %v1196_v63 }
0x1164   :  { %1197 = vrcp.f32 %v750_v0 }
0x116e   :  { %v1198_v1 = vpop.eup %1197 }
0x116f   :  { %v754_v7 = vmul.f32 %v1198_v1, %v659_v52 }
0x11d2   :  { %v757_v2 = vpop.permute.xlu1 %756 }
0x11d3   :  { %v759_v5 = vmul.f32 %v1198_v1, %v757_v2 }
0x11d5   :  { %761 = vrot.lane.b32.xlu0 %v759_v5, %s1282_s9 }
0x1247   :  { %v762_v9 = vpop.permute.xlu0 %761 }
0x1248   :  { %v764_v10 = vadd.f32 %v762_v9, %v754_v7 }
0x124a   :  { %1199 = vtanh.f32 %v764_v10 }
0x1254   :  { %v1200_v11 = vpop.eup %1199 }
0x1255   :  { %767 = vrot.lane.b32.xlu1 %v1200_v11, %s1282_s9 }
0x12c7   :  { %v768_v12 = vpop.permute.xlu1 %767 }
0x12c8   :  { %v770_v13 = vmul.f32 %v1198_v1, %v768_v12 }
0x12ca   :  { %772 = vrot.lane.b32.xlu0 %v770_v13, %s1283_s2 }
0x133c   :  { %v773_v14 = vpop.permute.xlu0 %772 }
0x133d   :  { %776 = vst.msk [vmem:[#allocation4 + $0xc] sm:$0x3] %vm27_vm1, %v773_v14  ;;  %1085 = vmatmul.mubr.msk.f32.vlgmr.msra.gmra.mrb[6].mxu1 %vm38_vm2, %v773_v14 }
0x1410   :  { %v847_v16 = vpop.f32.mrb[6].mxu1 }
0x1411   :  { %v851_v17 = vadd.f32 %v956_v15, %v847_v16  ;;  %v1086_v18 = vpop.f32.mrb[7].mxu1 }
0x1413   :  { %1201 = vtanh.f32 %v851_v17  ;;  %v958_v20 = vmul.f32 -1.442695, %v851_v17 }
0x1415   :  { %1203 = vpow2.f32 %v958_v20 }
0x141d   :  { %v1202_v19 = vpop.eup %1201 }
0x141e   :  { %861 = vrot.lane.b32.xlu1 %v1202_v19, %s1282_s9 }
0x141f   :  { %v1204_v21 = vpop.eup %1203 }
0x1420   :  { %v855_v22 = vadd.f32 1.0, %v1204_v21 }
0x1422   :  { %1205 = vrcp.f32 %v855_v22 }
0x142c   :  { %v1206_v23 = vpop.eup %1205 }
0x142d   :  { %v859_v26 = vmul.f32 %v1206_v23, %v764_v10 }
0x1490   :  { %v862_v24 = vpop.permute.xlu1 %861 }
0x1491   :  { %v864_v25 = vmul.f32 %v1206_v23, %v862_v24 }
0x1493   :  { %866 = vrot.lane.b32.xlu0 %v864_v25, %s1282_s9 }
0x1505   :  { %v867_v27 = vpop.permute.xlu0 %866 }
0x1506   :  { %v869_v28 = vadd.f32 %v867_v27, %v859_v26 }
0x1508   :  { %1207 = vtanh.f32 %v869_v28 }
0x1512   :  { %v1208_v29 = vpop.eup %1207 }
0x1513   :  { %872 = vrot.lane.b32.xlu1 %v1208_v29, %s1282_s9 }
0x1517   :  { %884 = vrot.lane.b32.xlu1 %v869_v28, %s1284_s0 }
0x1585   :  { %v873_v30 = vpop.permute.xlu1 %872 }
0x1586   :  { %v875_v31 = vmul.f32 %v1206_v23, %v873_v30 }
0x1588   :  { %877 = vrot.lane.b32.xlu0 %v875_v31, %s1283_s2 }
0x1589   :  { %v885_v32 = vpop.permute.xlu1 %884 }
0x158a   :  { %887 = vst.msk [vmem:[#allocation3] sm:$0x3] %vm27_vm1, %v885_v32  ;;  %892 = vst.msk [vmem:[#allocation8] sm:$0x3] %vm27_vm1, %v885_v32 }
0x15fa   :  { %v878_v33 = vpop.permute.xlu0 %877 }
0x15fb   :  { %881 = vst.msk [vmem:[#allocation4 + $0xe] sm:$0x3] %vm27_vm1, %v878_v33  ;;  %882 = vst.msk [vmem:[#allocation2] sm:$0x3] %vm27_vm1, %v878_v33 }
0x15fc   :  { %891 = vst.msk [vmem:[#allocation6] sm:$0x3] %vm27_vm1, %v878_v33 }
0x15fd   :  { %1220 = shalt.err (!%p1217_p4)
}
0x15fe   :  { %s1221_s7 = scalar_lea.hbm %s1530_s5, 32 }
0x15ff   :  { %p1222_p5 = scmp.ne.s32.totalorder %s1530_s5, %s1221_s7  ;;  %p1225_p6 = scmp.lt.u32.totalorder %s1221_s7, %s1530_s5 }
0x1601   :  { %p1227_p7 = pnand %p1225_p6, %p1222_p5 }
0x1603   :  { %1230 = shalt.err (!%p1227_p7)
}
0x1604   :  { %914 = dma.vmem_to_hbm [thread:$0]  %s912_s25, 32, %s1530_s5, [#allocation7]  }
0x1605   :  { %s1231_s14 = scalar_lea.vmem %s1470_s27, 256  ;;  %p1236_p9 = scmp.lt.s32.totalorder %s1470_s27, %s1470_s27 }
0x1606   :  { %p1232_p8 = scmp.ne.s32.totalorder %s1470_s27, %s1231_s14  ;;  %p1237_p10 = scmp.lt.s32.totalorder %s1231_s14, %s1231_s14 }
0x1608   :  { %p1238_p11 = por %p1237_p10, %p1236_p9 }
0x160a   :  { %p1239_p12 = pnand %p1238_p11, %p1232_p8 }
0x160c   :  { %1242 = shalt.err (!%p1239_p12)
}
0x160d   :  { %s1243_s17 = scalar_lea.hbm %s1529_s4, 256 }
0x160e   :  { %p1244_p13 = scmp.ne.s32.totalorder %s1529_s4, %s1243_s17  ;;  %p1247_p0 = scmp.lt.u32.totalorder %s1243_s17, %s1529_s4 }
0x1610   :  { %p1249_p1 = pnand %p1247_p0, %p1244_p13 }
0x1612   :  { %1252 = shalt.err (!%p1249_p1)
}
0x1613   :  { %s1288_s5 = smov 2   ;;  %s1253_s0 = scalar_lea.vmem %s1475_s29, 32 }
0x1614   :  { %904 = dma.vmem_to_hbm [thread:$0]  %s1470_s27, 256, %s1529_s4, [#allocation5], %s1282_s9, %s1282_s9, %s1288_s5  }
0x1615   :  { %p1254_p2 = scmp.ne.s32.totalorder %s1475_s29, %s1253_s0  ;;  %p1258_p3 = scmp.lt.s32.totalorder %s1475_s29, %s1475_s29 }
0x1616   :  { %p1259_p4 = scmp.lt.s32.totalorder %s1253_s0, %s1253_s0 }
0x1618   :  { %p1260_p5 = por %p1259_p4, %p1258_p3 }
0x161a   :  { %p1261_p6 = pnand %p1260_p5, %p1254_p2 }
0x161c   :  { %1264 = shalt.err (!%p1261_p6)
}
0x161d   :  { %s1265_s26 = scalar_lea.hbm %s1531_s6, 32 }
0x161e   :  { %p1266_p7 = scmp.ne.s32.totalorder %s1531_s6, %s1265_s26  ;;  %p1269_p8 = scmp.lt.u32.totalorder %s1265_s26, %s1531_s6 }
0x1620   :  { %p1271_p9 = pnand %p1269_p8, %p1266_p7 }
0x1622   :  { %1274 = shalt.err (!%p1271_p9)
}
0x1623   :  { %924 = dma.vmem_to_hbm [thread:$0]  %s1475_s29, 32, %s1531_s6, [#allocation7]  }
0x1624   :  { %1275 = dma.done.wait [#allocation5], 256  }
0x1625   :  { %1276 = vsyncadd [#allocation5], 4294967040 }
0x1626   :  { %1277 = dma.done.wait [#allocation7], 64  }
0x1627   :  { %1278 = vsyncadd [#allocation7], 4294967232 }
0x1628   :  { %934 = vsyncpa [#allocation5], 1 }
0x1629   :  { %935 = vsyncpa [#allocation7], 1 }

</bundles_post_ra>
